<compile_context>
chip_gen: v7x
topology: tpu7x:2x2x1
jax: 0.10.0
libtpu: 0.0.40
codegen_flags: <defaults>
</compile_context>

<pallas_src>
import functools

import jax
import jax.numpy as jnp
import numpy as np
from jax.experimental import pallas as pl
from jax.experimental.pallas import tpu as pltpu


def attention_kernel(hidden_ref, enc_ref, mask_ref, w_h_t_ref, w_e_t_ref,
                     b_ref, v_ref, out_ref):
    S, Bt, E2 = enc_ref.shape

    # --- encoder projection: one tall MXU contraction over the whole (S, Bt) tile.
    #     [S, Bt, E2] x [E2, Dd] -> [S, Bt, Dd], f32 accumulation.
    e_proj = jax.lax.dot_general(
        enc_ref[...], w_e_t_ref[...],
        dimension_numbers=(((2,), (0,)), ((), ())),
        preferred_element_type=jnp.float32)

    # --- hidden projection (tiny): [Bt, Dh] x [Dh, Dd] -> [Bt, Dd], bias folded
    #     in here once per tile (so only ONE broadcast add over [S, Bt, Dd]).
    h_proj = jnp.dot(hidden_ref[...], w_h_t_ref[...],
                     preferred_element_type=jnp.float32)
    h_bias = h_proj + b_ref[...]                               # [Bt, Dd]

    # energy = tanh(attn(cat(hidden, enc)))   (all elementwise work in f32)
    energy = jnp.tanh(e_proj + h_bias[None, :, :])             # [S, Bt, Dd]

    # attention = v(energy).squeeze(2): VPU broadcast-multiply + lane reduction.
    scores_sb = jnp.sum(energy * v_ref[...][None, :, :], axis=-1)    # [S, Bt]
    scores = jnp.transpose(scores_sb, (1, 0))                         # [Bt, S]

    # masked_fill(mask == 0, -1e10)
    scores = jnp.where(mask_ref[...] == 0, jnp.float32(-1e10), scores)

    # softmax over the S axis (torch dim=1), f32 throughout
    m = jnp.max(scores, axis=-1, keepdims=True)
    e = jnp.exp(scores - m)
    out_ref[...] = (e / jnp.sum(e, axis=-1, keepdims=True)).astype(out_ref.dtype)


def _pick_batch_tile(B, S, E2, itemsize, budget_bytes=12 << 20):
    """Largest batch tile whose double-buffered enc slab fits a conservative
    VMEM budget (safe under v5e/v6e/v7x scoped-VMEM defaults)."""
    per_row = 2 * S * E2 * itemsize            # 2 = double buffering
    bt = max(1, budget_bytes // per_row)
    if bt >= B:
        return B
    # Keep the second-minor block dim (8,128)-friendly when it is not the full B.
    return min(max(8, (bt // 8) * 8), B)


@functools.partial(jax.jit, static_argnames=("compute_dtype", "batch_tile"))
def attention_forward(hidden, encoder_outputs, mask, attn_w, attn_b, v_w,
                      *, compute_dtype=None, batch_tile=None):
    """hidden: [B, Dd], encoder_outputs: [S, B, 2*Eh] (torch layout), mask: [B, S]."""
    S, B, E2 = encoder_outputs.shape
    Dh = hidden.shape[1]                  # dec_hid_dim (hidden feature size)
    Dd = attn_w.shape[0]                  # dec_hid_dim (attn output size)

    if compute_dtype is None:
        compute_dtype = encoder_outputs.dtype
    compute_dtype = jnp.dtype(compute_dtype)

    # Streamed MXU inputs in compute_dtype (bf16 halves enc HBM traffic if the
    # producer already emits bf16); bias / v / mask / softmax stay in f32/int32.
    enc = encoder_outputs.astype(compute_dtype)
    hid = hidden.astype(compute_dtype)

    # Split + pre-transpose the concat-Linear weight (loop invariant; hoisted
    # out of the kernel so there is no per-grid-step transpose).
    w_h_t = jnp.transpose(attn_w[:, :Dh]).astype(compute_dtype)   # [Dh, Dd]
    w_e_t = jnp.transpose(attn_w[:, Dh:]).astype(compute_dtype)   # [E2, Dd]
    b2 = attn_b.reshape(1, Dd).astype(jnp.float32)
    v2 = v_w.reshape(1, Dd).astype(jnp.float32)
    mask_i = mask.astype(jnp.int32)

    Bt = batch_tile if batch_tile is not None else _pick_batch_tile(
        B, S, E2, compute_dtype.itemsize)
    grid = (pl.cdiv(B, Bt),)

    itemsize = compute_dtype.itemsize
    cost = pl.CostEstimate(
        flops=2 * B * S * E2 * Dd + 2 * B * Dh * Dd + 2 * B * S * Dd,
        transcendentals=B * S * Dd + B * S,                     # tanh + exp
        bytes_accessed=(B * S * E2 + B * Dh + (Dh + E2) * Dd) * itemsize
                       + B * S * 4 + 2 * Dd * 4 + B * S * 4,
    )

    return pl.pallas_call(
        attention_kernel,
        out_shape=jax.ShapeDtypeStruct((B, S), jnp.float32),
        grid=grid,
        in_specs=[
            pl.BlockSpec((Bt, Dh), lambda i: (i, 0)),         # hidden (batch-tiled)
            pl.BlockSpec((S, Bt, E2), lambda i: (0, i, 0)),   # enc, original [S,B,E2] layout
            pl.BlockSpec((Bt, S), lambda i: (i, 0)),          # mask  (batch-tiled)
            pl.BlockSpec((Dh, Dd), lambda i: (0, 0)),         # W_h^T (resident)
            pl.BlockSpec((E2, Dd), lambda i: (0, 0)),         # W_e^T (resident)
            pl.BlockSpec((1, Dd), lambda i: (0, 0)),          # bias  (resident)
            pl.BlockSpec((1, Dd), lambda i: (0, 0)),          # v     (resident)
        ],
        out_specs=pl.BlockSpec((Bt, S), lambda i: (i, 0)),    # lane-dense [Bt, S]
        compiler_params=pltpu.CompilerParams(
            dimension_semantics=("parallel",),                # 2 TCs on v7x
            vmem_limit_bytes=32 * 1024 * 1024,
        ),
        cost_estimate=cost,
    )(hid, enc, mask_i, w_h_t, w_e_t, b2, v2)


if __name__ == "__main__":
    # Small, deterministic test shapes.
    B, S = 2, 8
    ENC_HID, DEC_HID = 32, 32
    E2 = 2 * ENC_HID

    key = jax.random.PRNGKey(0)
    k1, k2, k3, k4, k5 = jax.random.split(key, 5)

    # Module parameters (shapes per nn.Linear in __init__), deterministic init.
    attn_w = jax.random.normal(k1, (DEC_HID, E2 + DEC_HID), jnp.float32) * 0.1  # attn.weight
    attn_b = jax.random.normal(k2, (DEC_HID,), jnp.float32) * 0.1               # attn.bias
    v_w = jax.random.normal(k3, (1, DEC_HID), jnp.float32) * 0.1                # v.weight (no bias)

    # Forward inputs (torch layouts).
    hidden = jax.random.normal(k4, (B, DEC_HID), jnp.float32)
    encoder_outputs = jax.random.normal(k5, (S, B, E2), jnp.float32)
    lens = jnp.array([S, S - 3], dtype=jnp.int32)
    mask = (jnp.arange(S)[None, :] < lens[:, None]).astype(jnp.int32)           # [B, S]

    # Pure-JAX reference of the exact torch semantics.
    hid_rep = jnp.repeat(hidden[:, None, :], S, axis=1)                 # [B, S, Dd]
    enc_bse = jnp.transpose(encoder_outputs, (1, 0, 2))                 # [B, S, 2Eh]
    cat = jnp.concatenate([hid_rep, enc_bse], axis=2)                   # [B, S, 2Eh+Dd]
    energy = jnp.tanh(cat @ attn_w.T + attn_b)                          # [B, S, Dd]
    attention = (energy @ v_w.T)[..., 0]                                # [B, S]
    attention = jnp.where(mask == 0, -1e10, attention)
    ref = np.asarray(jax.nn.softmax(attention, axis=1))

    # f32 path: exact semantics check.
    out_f32 = jax.block_until_ready(
        attention_forward(hidden, encoder_outputs, mask, attn_w, attn_b, v_w))
    np.testing.assert_allclose(np.asarray(out_f32), ref, rtol=1e-5, atol=1e-5)

    # bf16 fast path (halves enc HBM traffic; matmuls still accumulate in f32,
    # tanh/mask/softmax stay f32) — looser tolerance on the probabilities.
    out_bf16 = jax.block_until_ready(
        attention_forward(hidden, encoder_outputs, mask, attn_w, attn_b, v_w,
                          compute_dtype=jnp.bfloat16))
    np.testing.assert_allclose(np.asarray(out_bf16), ref, rtol=0, atol=3e-2)
    np.testing.assert_allclose(np.asarray(out_bf16).sum(axis=1),
                               np.ones(B, np.float32), rtol=1e-4, atol=1e-4)

    print("KERNEL_OK")
</pallas_src>

<mosaic_0001>
module attributes {stable_mosaic.version = 11 : i64} {
  func.func @attention_kernel(%arg0: i32, %arg1: memref<2x32xf32, #tpu.memory_space<vmem>>, %arg2: memref<8x2x64xf32, #tpu.memory_space<vmem>>, %arg3: memref<2x8xi32, #tpu.memory_space<vmem>>, %arg4: memref<32x32xf32, #tpu.memory_space<vmem>>, %arg5: memref<64x32xf32, #tpu.memory_space<vmem>>, %arg6: memref<1x32xf32, #tpu.memory_space<vmem>>, %arg7: memref<1x32xf32, #tpu.memory_space<vmem>>, %arg8: memref<2x8xf32, #tpu.memory_space<vmem>>) attributes {dimension_semantics = [#tpu.dimension_semantics<parallel>], iteration_bounds = array<i64: 1>, scalar_prefetch = 0 : i64, scratch_operands = 0 : i64, tpu.core_type = #tpu.core_type<tc>, window_params = [{transform_indices = @transform_0, window_bounds = array<i64: 2, 32>}, {transform_indices = @transform_1, window_bounds = array<i64: 8, 2, 64>}, {transform_indices = @transform_2, window_bounds = array<i64: 2, 8>}, {pipeline_mode = #tpu.pipeline_mode<synchronous>, transform_indices = @transform_3, window_bounds = array<i64: 32, 32>}, {pipeline_mode = #tpu.pipeline_mode<synchronous>, transform_indices = @transform_4, window_bounds = array<i64: 64, 32>}, {pipeline_mode = #tpu.pipeline_mode<synchronous>, transform_indices = @transform_5, window_bounds = array<i64: 1, 32>}, {pipeline_mode = #tpu.pipeline_mode<synchronous>, transform_indices = @transform_6, window_bounds = array<i64: 1, 32>}, {transform_indices = @transform_7, window_bounds = array<i64: 2, 8>}]} {
    %c0 = arith.constant 0 : index
    %c0_0 = arith.constant 0 : index
    %c0_1 = arith.constant 0 : index
    %0 = vector.load %arg2[%c0, %c0_0, %c0_1] : memref<8x2x64xf32, #tpu.memory_space<vmem>>, vector<8x2x64xf32>
    %c0_2 = arith.constant 0 : index
    %c0_3 = arith.constant 0 : index
    %1 = vector.load %arg5[%c0_2, %c0_3] : memref<64x32xf32, #tpu.memory_space<vmem>>, vector<64x32xf32>
    %cst = arith.constant dense<0.000000e+00> : vector<8x2x32xf32>
    %2 = tpu.matmul %0, %1, %cst {dimension_numbers = #tpu.dot_dimension_numbers<[2], [0], [0, 1], [1], [0, 0, 0, 1, 1, 1], [], []>} : vector<8x2x64xf32>, vector<64x32xf32>, vector<8x2x32xf32> -> vector<8x2x32xf32>
    %c0_4 = arith.constant 0 : index
    %c0_5 = arith.constant 0 : index
    %3 = vector.load %arg1[%c0_4, %c0_5] : memref<2x32xf32, #tpu.memory_space<vmem>>, vector<2x32xf32>
    %c0_6 = arith.constant 0 : index
    %c0_7 = arith.constant 0 : index
    %4 = vector.load %arg4[%c0_6, %c0_7] : memref<32x32xf32, #tpu.memory_space<vmem>>, vector<32x32xf32>
    %cst_8 = arith.constant dense<0.000000e+00> : vector<2x32xf32>
    %5 = tpu.matmul %3, %4, %cst_8 {dimension_numbers = #tpu.dot_dimension_numbers<[1], [0], [0], [1], [0, 0, 1, 1], [], []>} : vector<2x32xf32>, vector<32x32xf32>, vector<2x32xf32> -> vector<2x32xf32>
    %c0_9 = arith.constant 0 : index
    %c0_10 = arith.constant 0 : index
    %6 = vector.load %arg6[%c0_9, %c0_10] : memref<1x32xf32, #tpu.memory_space<vmem>>, vector<1x32xf32>
    %7 = vector.broadcast %6 : vector<1x32xf32> to vector<2x32xf32>
    %8 = arith.addf %5, %7 : vector<2x32xf32>
    %9 = vector.shape_cast %8 : vector<2x32xf32> to vector<1x2x32xf32>
    %10 = vector.broadcast %9 : vector<1x2x32xf32> to vector<8x2x32xf32>
    %11 = arith.addf %2, %10 : vector<8x2x32xf32>
    %12 = math.tanh %11 : vector<8x2x32xf32>
    %c0_11 = arith.constant 0 : index
    %c0_12 = arith.constant 0 : index
    %13 = vector.load %arg7[%c0_11, %c0_12] : memref<1x32xf32, #tpu.memory_space<vmem>>, vector<1x32xf32>
    %14 = vector.shape_cast %13 : vector<1x32xf32> to vector<1x1x32xf32>
    %15 = vector.broadcast %14 : vector<1x1x32xf32> to vector<8x2x32xf32>
    %16 = arith.mulf %12, %15 : vector<8x2x32xf32>
    %cst_13 = arith.constant dense<0.000000e+00> : vector<8x2xf32>
    %17 = vector.multi_reduction <add>, %16, %cst_13 [2] : vector<8x2x32xf32> to vector<8x2xf32>
    %18 = tpu.transpose %17, [1, 0] : vector<8x2xf32> -> vector<2x8xf32>
    %c0_14 = arith.constant 0 : index
    %c0_15 = arith.constant 0 : index
    %19 = vector.load %arg3[%c0_14, %c0_15] : memref<2x8xi32, #tpu.memory_space<vmem>>, vector<2x8xi32>
    %c0_i32 = arith.constant 0 : i32
    %20 = vector.broadcast %c0_i32 : i32 to vector<2x8xi32>
    %21 = arith.cmpi eq, %19, %20 : vector<2x8xi32>
    %cst_16 = arith.constant -1.000000e+10 : f32
    %22 = vector.broadcast %cst_16 : f32 to vector<2x8xf32>
    %23 = arith.select %21, %22, %18 : vector<2x8xi1>, vector<2x8xf32>
    %cst_17 = arith.constant dense<0xFF800000> : vector<2xf32>
    %24 = vector.multi_reduction <maximumf>, %23, %cst_17 [1] : vector<2x8xf32> to vector<2xf32>
    %25 = vector.shape_cast %24 : vector<2xf32> to vector<2x1xf32>
    %26 = vector.broadcast %25 : vector<2x1xf32> to vector<2x8xf32>
    %27 = arith.subf %23, %26 : vector<2x8xf32>
    %28 = math.exp %27 : vector<2x8xf32>
    %cst_18 = arith.constant dense<0.000000e+00> : vector<2xf32>
    %29 = vector.multi_reduction <add>, %28, %cst_18 [1] : vector<2x8xf32> to vector<2xf32>
    %30 = vector.shape_cast %29 : vector<2xf32> to vector<2x1xf32>
    %31 = vector.broadcast %30 : vector<2x1xf32> to vector<2x8xf32>
    %32 = arith.divf %28, %31 : vector<2x8xf32>
    %c0_19 = arith.constant 0 : index
    %c0_20 = arith.constant 0 : index
    %33 = vector.load %arg8[%c0_19, %c0_20] : memref<2x8xf32, #tpu.memory_space<vmem>>, vector<2x8xf32>
    tpu.vector_store %arg8[%c0_19, %c0_20], %32 {strides = array<i32>} : memref<2x8xf32, #tpu.memory_space<vmem>>, vector<2x8xf32>,
    return
  }
  func.func @transform_0(%arg0: i32) -> (i32, i32) {
    %c0_i32 = arith.constant 0 : i32
    %c0_i32_0 = arith.constant 0 : i32
    return %arg0, %c0_i32 : i32, i32
  }
  func.func @transform_1(%arg0: i32) -> (i32, i32, i32) {
    %c0_i32 = arith.constant 0 : i32
    %c0_i32_0 = arith.constant 0 : i32
    %c0_i32_1 = arith.constant 0 : i32
    return %c0_i32, %arg0, %c0_i32_0 : i32, i32, i32
  }
  func.func @transform_2(%arg0: i32) -> (i32, i32) {
    %c0_i32 = arith.constant 0 : i32
    %c0_i32_0 = arith.constant 0 : i32
    return %arg0, %c0_i32 : i32, i32
  }
  func.func @transform_3(%arg0: i32) -> (i32, i32) {
    %c0_i32 = arith.constant 0 : i32
    %c0_i32_0 = arith.constant 0 : i32
    %c0_i32_1 = arith.constant 0 : i32
    return %c0_i32, %c0_i32_0 : i32, i32
  }
  func.func @transform_4(%arg0: i32) -> (i32, i32) {
    %c0_i32 = arith.constant 0 : i32
    %c0_i32_0 = arith.constant 0 : i32
    %c0_i32_1 = arith.constant 0 : i32
    return %c0_i32, %c0_i32_0 : i32, i32
  }
  func.func @transform_5(%arg0: i32) -> (i32, i32) {
    %c0_i32 = arith.constant 0 : i32
    %c0_i32_0 = arith.constant 0 : i32
    %c0_i32_1 = arith.constant 0 : i32
    return %c0_i32, %c0_i32_0 : i32, i32
  }
  func.func @transform_6(%arg0: i32) -> (i32, i32) {
    %c0_i32 = arith.constant 0 : i32
    %c0_i32_0 = arith.constant 0 : i32
    %c0_i32_1 = arith.constant 0 : i32
    return %c0_i32, %c0_i32_0 : i32, i32
  }
  func.func @transform_7(%arg0: i32) -> (i32, i32) {
    %c0_i32 = arith.constant 0 : i32
    %c0_i32_0 = arith.constant 0 : i32
    return %arg0, %c0_i32 : i32, i32
  }
}

</mosaic_0001>

<bundles_post_ra>
// kernel: attention_forward.1
= control target key start
LH: loop header
LB: loop body
LE: loop exit
PB: predicated region body
PF: predicated region fallthrough
CT: control target
= control target key end

     0   :  { %v142_v3 = vlaneseq  ;;  %v594_v4 = vmov 0.0|0.0   ;;  %vm595_vm0 = vmmov 0   ;;  %v596_v9 = vmov 0.0   ;;  %s740_s0 = inlined_call_operand.vmem [shape: f32[2,32], index: 0, kind: input, shape index: {}]   ;;  %s741_s1 = inlined_call_operand.vmem [shape: f32[8,2,64], index: 1, kind: input, shape index: {}]   ;;  %s742_s2 = inlined_call_operand.vmem [shape: s32[2,8], index: 2, kind: input, shape index: {}]   ;;  %s743_s3 = inlined_call_operand.vmem [shape: f32[32,32], index: 3, kind: input, shape index: {}]   ;;  %s744_s4 = inlined_call_operand.vmem [shape: f32[64,32], index: 4, kind: input, shape index: {}]   ;;  %s745_s5 = inlined_call_operand.vmem [shape: f32[1,32], index: 5, kind: input, shape index: {}]   ;;  %s746_s6 = inlined_call_operand.vmem [shape: f32[1,32], index: 6, kind: input, shape index: {}]   ;;  %s747_s7 = inlined_call_operand.hbm [shape: f32[2,8], index: 7, kind: output, shape index: {}]  }
   0x1   :  { %v44_v0 = vld [vmem:[%s743_s3] sm:$0xff]  ;;  %v45_v1 = vld [vmem:[%s743_s3 + $0x8] sm:$0xff]  ;;  %523 = vmatprep.subr.bf16.mxu0 %v594_v4  ;;  %v46_v7 = vld [vmem:[%s743_s3 + $0x10] sm:$0xff]  ;;  %501 = vmatprep.mubr.msk.f32.mxu0 %vm595_vm0, %v596_v9  ;;  %v597_v13 = vmov 1983009808   ;;  %vm55_vm1 = vcmask 261120  }
   0x2   :  { %v35_v2 = vld [vmem:[%s744_s4] sm:$0xff]  ;;  %v524_v5 = vpack.c.bf16 %v45_v1, %v44_v0  ;;  %v36_v6 = vld [vmem:[%s744_s4 + $0x8] sm:$0xff]  ;;  %v47_v8 = vld [vmem:[%s743_s3 + $0x18] sm:$0xff]  ;;  %v140_v14 = vunpack.c.l.s4 %v597_v13  ;;  %v664_v15 = vshrl.u32 %v142_v3, 7 }
   0x3   :  { %v529_v10 = vpack.c.bf16 %v36_v6, %v35_v2  ;;  %v37_v11 = vld [vmem:[%s744_s4 + $0x10] sm:$0xff]  ;;  %v38_v12 = vld [vmem:[%s744_s4 + $0x18] sm:$0xff]  ;;  %v527_v16 = vpack.c.bf16 %v47_v8, %v46_v7  ;;  %v39_v18 = vld [vmem:[%s744_s4 + $0x20] sm:$0xff] }
   0x4   :  { %525 = vmatpush3.bf16.msra.mxu0 %v524_v5  ;;  %v533_v17 = vpack.c.bf16 %v38_v12, %v37_v11  ;;  %v40_v19 = vld [vmem:[%s744_s4 + $0x28] sm:$0xff]  ;;  %v27_v20 = vld [vmem:[%s741_s1] sm:$0x3]  ;;  %v28_v21 = vld [vmem:[%s741_s1 + $0x2] sm:$0x3]  ;;  %v141_v22 = vunpack.c.0.s8 %v140_v14 }
   0x5   :  { %530 = vmatprep.subr.bf16.mxu1 %v529_v10  ;;  %526 = vmatprep.subr.bf16.mxu0 %v594_v4  ;;  %v43_v23 = vld [vmem:[%s740_s0] sm:$0x3]  ;;  %v29_v24 = vld [vmem:[%s741_s1 + $0x4] sm:$0x3]  ;;  %v30_v25 = vld [vmem:[%s741_s1 + $0x6] sm:$0x3]  ;;  %v137_v26 = vcombine.low %v27_v20, %v28_v21  ;;  %v537_v28 = vpack.c.bf16 %v40_v19, %v39_v18 }
   0x6   :  { %532 = vmatpush3.bf16.msra.mxu1 %v529_v10  ;;  %v31_v27 = vld [vmem:[%s741_s1 + $0x8] sm:$0x3]  ;;  %v138_v29 = vcombine.low %v29_v24, %v30_v25  ;;  %v144_v30 = vsub.s32 %v141_v22, %v664_v15  ;;  %v32_v31 = vld [vmem:[%s741_s1 + $0xa] sm:$0x3]  ;;  %v33_v32 = vld [vmem:[%s741_s1 + $0xc] sm:$0x3] }
   0x7   :  { %534 = vmatprep.subr.bf16.mxu1 %v533_v17  ;;  %v34_v33 = vld [vmem:[%s741_s1 + $0xe] sm:$0x3]  ;;  %v41_v34 = vld [vmem:[%s744_s4 + $0x30] sm:$0xff]  ;;  %v42_v35 = vld [vmem:[%s744_s4 + $0x38] sm:$0xff] }
   0x8   :  { %528 = vmatpush3.bf16.msra.mxu0 %v527_v16 }
   0x9   :  { %12 = vsyncpa [#allocation3], 0  ;;  %v145_v36 = vrot.slane %v137_v26, %v144_v30  ;;  %v152_v37 = vrot.slane %v138_v29, %v144_v30  ;;  %v154_v38 = vcombine.low %v31_v27, %v32_v31  ;;  %v155_v39 = vcombine.low %v33_v32, %v34_v33  ;;  %v473_v45 = vld [vmem:[%s745_s5] ss:$0 sm:$0xff]  ;;  %s598_s19 = smov [#allocation2]  }
   0xa   :  { %536 = vmatpush3.bf16.msra.mxu1 %v533_v17  ;;  %vm182_vm2 = vcmask 523264   ;;  %v541_v40 = vpack.c.bf16 %v42_v35, %v41_v34  ;;  %v477_v2 = vld [vmem:[%s746_s6] ss:$0 sm:$0xff]  ;;  %vm329_vm3 = vcmask 254976   ;;  %v363_v29 = vand.u32 127, %v142_v3  ;;  %s465_s20 = sshll.u32 %s598_s19, 4  ;;  %s466_s20 = int_to_ptr.vmem [resolvable:$true] %s465_s20 }
   0xb   :  { %502 = vmatmul.mubr.msk.f32.vlgmr.msra.gmra.mrb[0].mxu0 %vm55_vm1, %v43_v23  ;;  %538 = vmatprep.subr.bf16.mxu1 %v537_v28  ;;  %v153_v41 = vcombine.low %v145_v36, %v152_v37  ;;  %v162_v42 = vrot.slane %v154_v38, %v144_v30  ;;  %v169_v43 = vrot.slane %v155_v39, %v144_v30  ;;  %vm396_vm4 = vcmask 1041409   ;;  %p575_p1 = scmp.lt.s32.totalorder %s466_s20, %s466_s20 }
   0xc   :  { %v366_v32 = vsub.s32 %v363_v29, %v664_v15  ;;  %vm398_vm5 = vcmask 1042434   ;;  %vm400_vm6 = vcmask 1043459   ;;  %vm402_vm7 = vcmask 1044484  }
   0xd   :  { %520 = vmatprep.mubr.msk.f32.mxu1 %vm182_vm2, %v153_v41  ;;  %v170_v44 = vcombine.low %v162_v42, %v169_v43  ;;  %vm404_vm8 = vcmask 1045509   ;;  %vm406_vm9 = vcmask 1046534   ;;  %vm408_vm10 = vcmask 1047559  }
   0xe   :  { %540 = vmatpush3.bf16.msra.mxu1 %v537_v28  ;;  %vm446_vm12 = vcmask 58368  }
   0xf   :  { %542 = vmatprep.subr.bf16.mxu1 %v541_v40 }
  0x12   :  { %544 = vmatpush3.bf16.msra.mxu1 %v541_v40 }
  0x15   :  { %521 = vmatmul.mubr.msk.f32.vlgmr.msra.gmra.mrb[0].mxu1 %vm182_vm2, %v170_v44 }
  0xde   :  { %v125_v46 = vpop.f32.mrb[0].mxu0 }
  0xdf   :  { %v126_v47 = vadd.f32 %v473_v45, %v125_v46  ;;  %v503_v48 = vpop.f32.mrb[1].mxu0 }
  0xe1   :  { %v172_v49 = vcombine.low %v126_v47, %v126_v47 }
  0xe3   :  { %v179_v50 = vrot.slane %v172_v49, %v144_v30 }
  0xe5   :  { %v180_v51 = vcombine.low %v179_v50, %v179_v50 }
  0xe8   :  { %v522_v52 = vpop.f32.mrb[0].mxu1 }
  0xe9   :  { %v259_v53 = vadd.f32 %v522_v52, %v180_v51  ;;  %v253_v54 = vpop.f32.mrb[1].mxu1  ;;  %v443_v52 = vld [vmem:[%s742_s2] sm:$0x3]  ;;  %s570_s2 = scalar_lea.vmem %s466_s20, 32 }
  0xea   :  { %v254_v55 = vadd.f32 %v253_v54, %v180_v51  ;;  %vm444_vm11 = vcmp.eq.s32.totalorder %v443_v52, 0  ;;  %p571_p0 = scmp.ne.s32.totalorder %s466_s20, %s570_s2  ;;  %p576_p2 = scmp.lt.s32.totalorder %s570_s2, %s570_s2 }
  0xeb   :  { %v281_v56 = vcombine.high %v259_v53, %v259_v53  ;;  %v288_v57 = vrot.slane %v259_v53, %v144_v30 }
  0xec   :  { %v264_v58 = vcombine.high %v254_v55, %v254_v55  ;;  %v271_v59 = vrot.slane %v254_v55, %v144_v30  ;;  %p577_p3 = por %p576_p2, %p575_p1 }
  0xed   :  { %v296_v60 = vcombine.high %v288_v57, %v288_v57  ;;  %v295_v63 = vrot.slane %v281_v56, %v144_v30 }
  0xee   :  { %v278_v61 = vrot.slane %v264_v58, %v144_v30  ;;  %v279_v62 = vcombine.high %v271_v59, %v271_v59  ;;  %550 = vtanh.f32 %v271_v59  ;;  %p578_p4 = pnand %p577_p3, %p571_p0 }
  0xef   :  { %552 = vtanh.f32 %v296_v60  ;;  %v297_v1 = vcombine.high %v295_v63, %v295_v63 }
  0xf0   :  { %v280_v0 = vcombine.high %v278_v61, %v278_v61  ;;  %554 = vtanh.f32 %v288_v57 }
  0xf1   :  { %556 = vtanh.f32 %v279_v62 }
  0xf2   :  { %558 = vtanh.f32 %v278_v61 }
  0xf3   :  { %560 = vtanh.f32 %v280_v0 }
  0xf4   :  { %562 = vtanh.f32 %v295_v63 }
  0xf5   :  { %564 = vtanh.f32 %v297_v1 }
  0xf8   :  { %v551_v4 = vpop.eup %550 }
  0xf9   :  { %v553_v5 = vpop.eup %552  ;;  %v321_v6 = vmul.f32 %v551_v4, %v477_v2 }
  0xfa   :  { %v326_v7 = vmul.f32 %v553_v5, %v477_v2  ;;  %v555_v8 = vpop.eup %554 }
  0xfb   :  { %v330_v9 = vsel %vm329_vm3, %v321_v6, 0.0  ;;  %v557_v10 = vpop.eup %556  ;;  %v325_v18 = vmul.f32 %v555_v8, %v477_v2 }
  0xfc   :  { %331 = vadd.xlane.f32.xlu0 %v330_v9  ;;  %v345_v11 = vsel %vm329_vm3, %v326_v7, 0.0  ;;  %v559_v12 = vpop.eup %558  ;;  %v322_v13 = vmul.f32 %v557_v10, %v477_v2 }
  0xfd   :  { %346 = vadd.xlane.f32.xlu1 %v345_v11  ;;  %v561_v14 = vpop.eup %560  ;;  %v323_v16 = vmul.f32 %v559_v12, %v477_v2  ;;  %v342_v23 = vsel %vm329_vm3, %v325_v18, 0.0 }
  0xfe   :  { %v333_v17 = vsel %vm329_vm3, %v322_v13, 0.0  ;;  %v563_v19 = vpop.eup %562  ;;  %v324_v21 = vmul.f32 %v561_v14, %v477_v2 }
  0xff   :  { %v336_v20 = vsel %vm329_vm3, %v323_v16, 0.0  ;;  %v565_v22 = vpop.eup %564  ;;  %v327_v24 = vmul.f32 %v563_v19, %v477_v2 }
 0x100   :  { %334 = vadd.xlane.f32.xlu0 %v333_v17  ;;  %v339_v25 = vsel %vm329_vm3, %v324_v21, 0.0  ;;  %v328_v26 = vmul.f32 %v565_v22, %v477_v2 }
 0x101   :  { %337 = vadd.xlane.f32.xlu1 %v336_v20  ;;  %v348_v27 = vsel %vm329_vm3, %v327_v24, 0.0 }
 0x102   :  { %v351_v28 = vsel %vm329_vm3, %v328_v26, 0.0 }
 0x104   :  { %343 = vadd.xlane.f32.xlu0 %v342_v23 }
 0x105   :  { %340 = vadd.xlane.f32.xlu1 %v339_v25 }
 0x108   :  { %349 = vadd.xlane.f32.xlu0 %v348_v27 }
 0x109   :  { %352 = vadd.xlane.f32.xlu1 %v351_v28 }
 0x189   :  { %v332_v30 = vpop.xlane.xlu0 %331 }
 0x18a   :  { %v347_v31 = vpop.xlane.xlu1 %346  ;;  %v367_v36 = vrot.slane %v332_v30, %v366_v32 }
 0x18b   :  { %v387_v3 = vrot.slane %v347_v31, %v366_v32 }
 0x18d   :  { %v335_v33 = vpop.xlane.xlu0 %334 }
 0x18e   :  { %v371_v34 = vrot.slane %v335_v33, %v366_v32  ;;  %v338_v35 = vpop.xlane.xlu1 %337 }
 0x18f   :  { %v375_v37 = vrot.slane %v338_v35, %v366_v32 }
 0x190   :  { %v397_v38 = vsel %vm396_vm4, %v371_v34, %v367_v36 }
 0x191   :  { %v344_v39 = vpop.xlane.xlu0 %343  ;;  %v399_v42 = vsel %vm398_vm5, %v375_v37, %v397_v38 }
 0x192   :  { %v341_v40 = vpop.xlane.xlu1 %340  ;;  %v383_v43 = vrot.slane %v344_v39, %v366_v32 }
 0x193   :  { %v379_v41 = vrot.slane %v341_v40, %v366_v32 }
 0x195   :  { %v401_v44 = vsel %vm400_vm6, %v379_v41, %v399_v42  ;;  %v350_v45 = vpop.xlane.xlu0 %349 }
 0x196   :  { %v391_v15 = vrot.slane %v350_v45, %v366_v32  ;;  %v353_v46 = vpop.xlane.xlu1 %352  ;;  %v403_v47 = vsel %vm402_vm7, %v383_v43, %v401_v44 }
 0x197   :  { %v395_v48 = vrot.slane %v353_v46, %v366_v32  ;;  %v405_v49 = vsel %vm404_vm8, %v387_v3, %v403_v47 }
 0x198   :  { %v407_v50 = vsel %vm406_vm9, %v391_v15, %v405_v49 }
 0x199   :  { %v409_v51 = vsel %vm408_vm10, %v395_v48, %v407_v50 }
 0x19a   :  { %411 = vxpose.xlu0.b32.start.end [1/1] (short) (narrow) %v409_v51, 8 }
 0x21a   :  { %v427_v53 = vpop.trf.xlu0 }
 0x21b   :  { %v445_v54 = vsel %vm444_vm11, -1e+10, %v427_v53 }
 0x21c   :  { %v447_v55 = vsel %vm446_vm12, %v445_v54, -inf }
 0x21d   :  { %448 = vmax.xlane.f32.xlu1 %v447_v55 }
 0x2aa   :  { %v449_v56 = vpop.xlane.xlu1 %448 }
 0x2ab   :  { %v450_v57 = vsub.f32 %v445_v54, %v449_v56 }
 0x2ad   :  { %v451_v58 = vmul.f32 1.442695, %v450_v57 }
 0x2af   :  { %566 = vpow2.f32 %v451_v58 }
 0x2b9   :  { %v567_v59 = vpop.eup %566 }
 0x2ba   :  { %v453_v60 = vsel %vm446_vm12, %v567_v59, 0.0 }
 0x2bb   :  { %454 = vadd.xlane.f32.xlu1 %v453_v60 }
 0x348   :  { %v455_v61 = vpop.xlane.xlu1 %454 }
 0x349   :  { %568 = vrcp.f32 %v455_v61 }
 0x353   :  { %v569_v62 = vpop.eup %568 }
 0x354   :  { %v457_v63 = vmul.f32 %v569_v62, %v567_v59 }
 0x356   :  { %458 = vst.msk [vmem:[#allocation2] sm:$0x3] %vm446_vm12, %v457_v63 }
 0x357   :  { %581 = shalt.err (!%p578_p4)
}
 0x358   :  { %s582_s23 = scalar_lea.hbm %s747_s7, 32 }
 0x359   :  { %p583_p5 = scmp.ne.s32.totalorder %s747_s7, %s582_s23  ;;  %p586_p6 = scmp.lt.u32.totalorder %s582_s23, %s747_s7 }
 0x35b   :  { %p588_p7 = pnand %p586_p6, %p583_p5 }
 0x35d   :  { %591 = shalt.err (!%p588_p7)
}
 0x35e   :  { %468 = dma.vmem_to_hbm [thread:$0]  %s466_s20, 32, %s747_s7, [#allocation3]  }
 0x35f   :  { %592 = dma.done.wait [#allocation3], 32  }
 0x360   :  { %593 = vsyncadd [#allocation3], 4294967264 }
 0x361   :  { %472 = vsyncpa [#allocation3], 1 }

</bundles_post_ra>
